<compile_context>
chip_gen: v6e
topology: v6e:2x2x1
jax: 0.10.0
libtpu: 0.0.40
codegen_flags: <defaults>
</compile_context>

<pallas_src>
import functools

import jax
import jax.numpy as jnp
from jax import lax
from jax.experimental import pallas as pl
from jax.experimental.pallas import tpu as pltpu

_MIB = 1024 * 1024


# --------------------------------------------------------------------------
# Helpers
# --------------------------------------------------------------------------
def _int_pow(x, n: int):
    """x**n for a compile-time positive integer n using only VPU multiplies."""
    result = None
    base = x
    while n > 0:
        if n & 1:
            result = base if result is None else result * base
        n >>= 1
        if n:
            base = base * base
    return result


def _static_float(p):
    """p as a Python float if its value is known at trace time, else None."""
    if isinstance(p, bool):
        return None
    if isinstance(p, (int, float)):
        return float(p)
    try:
        return float(p)
    except (TypeError, ValueError,
            jax.errors.ConcretizationTypeError,
            jax.errors.TracerArrayConversionError):
        return None


def _make_static_pow(p: float):
    """Return (pow_fn, transcendentals_per_elem, bf16_ok) for trace-time p>0."""
    if p == round(p) and 1 <= int(round(p)) <= 16:
        n = int(round(p))
        return (lambda x: _int_pow(x, n)), 0, True
    two_p = 2.0 * p
    if two_p == round(two_p) and 0.5 <= p <= 16.5:
        n = int(p)  # p = n + 0.5

        def pow_fn(x):
            s = jnp.sqrt(x)
            return s if n == 0 else _int_pow(x, n) * s

        return pow_fn, 1, True

    def pow_fn(x):  # static but non-(half-)integer p: exp/log, f32 only
        return jnp.exp(jnp.asarray(p, x.dtype) * jnp.log(x))

    return pow_fn, 2, False


@functools.lru_cache(maxsize=1)
def _has_bf16_valu() -> bool:
    """bf16 VALU exists on v6e / v7x; not on v5e.  Conservative default False."""
    try:
        kind = jax.devices()[0].device_kind.lower()
    except Exception:
        return False
    return any(tag in kind for tag in ("v6", "v7", "tpu7"))


def _vmem_plan():
    """(tile-selection budget, scoped vmem_limit_bytes), generation-aware."""
    physical = 64 * _MIB
    try:
        physical = int(pltpu.get_tpu_info().vmem_capacity_bytes)
    except Exception:
        pass
    # ~5/8 of per-core VMEM, capped at 64 MiB:
    #   128 MiB chips (v5e / v6e) -> 64 MiB budget; v7x (64 MiB/TC) -> 40 MiB.
    budget = min(physical * 5 // 8, 64 * _MIB)
    limit = max(budget + 16 * _MIB, 32 * _MIB)
    limit = min(limit, physical - 4 * _MIB)
    limit = max(limit, budget)
    return budget, limit


def _plan_tiles(bc: int, hw: int, itemsize: int, budget: int):
    """Pick (row_tile R, hw_tile or None) from a padding-aware VMEM model."""
    lane = 128
    sub = {4: 8, 2: 16, 1: 32}.get(itemsize, 8)
    hw_pad = pl.cdiv(hw, lane) * lane
    # Per-row bytes at full spatial width: double-buffered input tile plus a
    # conservative 3 f32 temporaries (cast / clamp / pow chain may not fuse).
    per_elem = 2 * itemsize + 3 * 4
    per_row = hw_pad * per_elem

    if per_row * sub <= budget:
        r = (budget // per_row) // sub * sub
        # Keep >= 4 grid steps (2 TensorCores on v7x x 2 pipeline stages) when
        # BC allows it, so megacore sharding and DMA/compute overlap survive.
        min_steps = 4
        r_cap = max(sub, (pl.cdiv(bc, min_steps) // sub) * sub)
        r = max(sub, min(r, r_cap))
        if r >= bc:
            r = bc
        return r, None

    # Spatial extent too large for even a minimum row tile: tile HW as well and
    # accumulate partial sums in an (R, 1) f32 VMEM scratch.
    r = sub if bc > sub else bc
    hw_tile = (budget // (max(r, 1) * per_elem)) // lane * lane
    hw_tile = max(lane, min(hw_tile, hw_pad))
    return r, hw_tile


# --------------------------------------------------------------------------
# Kernels
# --------------------------------------------------------------------------
def _gem_kernel_rows(pow_fn, inv_p, eps, compute_dtype, hw):
    """1-D grid over rows; full spatial extent in one lane-dense block."""

    def kernel(x_ref, o_ref):
        x = x_ref[...].astype(compute_dtype)
        xc = jnp.maximum(x, jnp.asarray(eps, compute_dtype))   # clamp(min=eps)
        xp = pow_fn(xc).astype(jnp.float32)                    # x^p
        m = jnp.sum(xp, axis=-1, keepdims=True) * jnp.float32(1.0 / hw)
        if inv_p == 1.0:
            out = m
        else:
            out = jnp.exp(jnp.float32(inv_p) * jnp.log(m))     # (.)^(1/p), (R,1)
        o_ref[...] = out.astype(o_ref.dtype)

    return kernel


def _gem_kernel_rows_hw(pow_fn, inv_p, eps, compute_dtype, hw, hw_tile):
    """2-D grid (rows, spatial): f32 accumulator scratch + masked partial block."""

    def kernel(x_ref, o_ref, acc_ref):
        k = pl.program_id(1)

        @pl.when(k == 0)
        def _():
            acc_ref[...] = jnp.zeros_like(acc_ref)

        x = x_ref[...].astype(compute_dtype)
        xc = jnp.maximum(x, jnp.asarray(eps, compute_dtype))
        xp = pow_fn(xc).astype(jnp.float32)
        lane = lax.broadcasted_iota(jnp.int32, xp.shape, dimension=1)
        valid = (k * hw_tile + lane) < hw
        xp = jnp.where(valid, xp, jnp.float32(0.0))
        acc_ref[...] += jnp.sum(xp, axis=-1, keepdims=True)

        @pl.when(k == pl.num_programs(1) - 1)
        def _():
            m = acc_ref[...] * jnp.float32(1.0 / hw)
            if inv_p == 1.0:
                out = m
            else:
                out = jnp.exp(jnp.float32(inv_p) * jnp.log(m))
            o_ref[...] = out.astype(o_ref.dtype)

    return kernel


def _gem_kernel_generic_rows(eps, hw):
    """Learnable / traced p from SMEM scalar prefetch.  EUP-bound (2 tx/elem)."""

    def kernel(p_ref, x_ref, o_ref):
        p = p_ref[0]
        x = x_ref[...].astype(jnp.float32)
        xc = jnp.maximum(x, jnp.float32(eps))
        xp = jnp.exp(p * jnp.log(xc))
        m = jnp.sum(xp, axis=-1, keepdims=True) * jnp.float32(1.0 / hw)
        out = jnp.exp(jnp.log(m) * (1.0 / p))
        o_ref[...] = out.astype(o_ref.dtype)

    return kernel


def _gem_kernel_generic_rows_hw(eps, hw, hw_tile):
    def kernel(p_ref, x_ref, o_ref, acc_ref):
        k = pl.program_id(1)

        @pl.when(k == 0)
        def _():
            acc_ref[...] = jnp.zeros_like(acc_ref)

        p = p_ref[0]
        x = x_ref[...].astype(jnp.float32)
        xc = jnp.maximum(x, jnp.float32(eps))
        xp = jnp.exp(p * jnp.log(xc))
        lane = lax.broadcasted_iota(jnp.int32, xp.shape, dimension=1)
        valid = (k * hw_tile + lane) < hw
        xp = jnp.where(valid, xp, jnp.float32(0.0))
        acc_ref[...] += jnp.sum(xp, axis=-1, keepdims=True)

        @pl.when(k == pl.num_programs(1) - 1)
        def _():
            m = acc_ref[...] * jnp.float32(1.0 / hw)
            out = jnp.exp(jnp.log(m) * (1.0 / p_ref[0]))
            o_ref[...] = out.astype(o_ref.dtype)

    return kernel


# --------------------------------------------------------------------------
# Wrapper
# --------------------------------------------------------------------------
def gem_pallas(x, p, eps: float = 1e-6, *, vmem_budget_bytes=None):
    """GeM pooling. x: (B, C, H, W); p: scalar exponent. Returns (B, C, 1, 1)."""
    B, C, H, W = x.shape
    BC, HW = B * C, H * W
    x2d = x.reshape(BC, HW)
    itemsize = jnp.dtype(x.dtype).itemsize

    budget, vmem_limit = _vmem_plan()
    if vmem_budget_bytes is not None:
        budget = int(vmem_budget_bytes)
    R, hw_tile = _plan_tiles(BC, HW, itemsize, budget)

    out_shape = jax.ShapeDtypeStruct((BC, 1), x.dtype)
    bytes_acc = int(BC * HW * itemsize + BC * itemsize)

    p_static = _static_float(p)

    if p_static is not None and p_static > 0.0:
        pow_fn, elem_tx, bf16_ok = _make_static_pow(p_static)
        inv_p = 1.0 / p_static
        compute_dtype = jnp.float32
        if bf16_ok and x.dtype == jnp.bfloat16 and _has_bf16_valu():
            compute_dtype = jnp.bfloat16    # clamp+pow in bf16; mean stays f32
        cost = pl.CostEstimate(
            flops=int(BC * HW * 6),
            transcendentals=int(BC * HW * elem_tx + 2 * BC),
            bytes_accessed=bytes_acc)

        if hw_tile is None:
            grid = (pl.cdiv(BC, R),)
            grid_spec = pltpu.PrefetchScalarGridSpec(
                num_scalar_prefetch=0, grid=grid,
                in_specs=[pl.BlockSpec((R, HW), lambda i: (i, 0))],
                out_specs=pl.BlockSpec((R, 1), lambda i: (i, 0)))
            kernel = _gem_kernel_rows(pow_fn, inv_p, eps, compute_dtype, HW)
            sems = ("parallel",)
        else:
            grid = (pl.cdiv(BC, R), pl.cdiv(HW, hw_tile))
            grid_spec = pltpu.PrefetchScalarGridSpec(
                num_scalar_prefetch=0, grid=grid,
                in_specs=[pl.BlockSpec((R, hw_tile), lambda i, k: (i, k))],
                out_specs=pl.BlockSpec((R, 1), lambda i, k: (i, 0)),
                scratch_shapes=[pltpu.VMEM((R, 1), jnp.float32)])
            kernel = _gem_kernel_rows_hw(pow_fn, inv_p, eps, compute_dtype,
                                         HW, hw_tile)
            sems = ("parallel", "arbitrary")

        out2d = pl.pallas_call(
            kernel,
            out_shape=out_shape,
            grid_spec=grid_spec,
            compiler_params=pltpu.CompilerParams(
                dimension_semantics=sems, vmem_limit_bytes=int(vmem_limit)),
            cost_estimate=cost,
        )(x2d)
    else:
        # Learnable / traced p: SMEM scalar prefetch + exp/log.  EUP-bound —
        # will not reach the HBM roofline; documented/accepted trade-off.
        p_arr = jnp.asarray(p, dtype=jnp.float32).reshape(1)
        cost = pl.CostEstimate(
            flops=int(BC * HW * 4),
            transcendentals=int(2 * BC * HW + 2 * BC),
            bytes_accessed=bytes_acc)

        if hw_tile is None:
            grid = (pl.cdiv(BC, R),)
            grid_spec = pltpu.PrefetchScalarGridSpec(
                num_scalar_prefetch=1, grid=grid,
                in_specs=[pl.BlockSpec((R, HW), lambda i, pr: (i, 0))],
                out_specs=pl.BlockSpec((R, 1), lambda i, pr: (i, 0)))
            kernel = _gem_kernel_generic_rows(eps, HW)
            sems = ("parallel",)
        else:
            grid = (pl.cdiv(BC, R), pl.cdiv(HW, hw_tile))
            grid_spec = pltpu.PrefetchScalarGridSpec(
                num_scalar_prefetch=1, grid=grid,
                in_specs=[pl.BlockSpec((R, hw_tile), lambda i, k, pr: (i, k))],
                out_specs=pl.BlockSpec((R, 1), lambda i, k, pr: (i, 0)),
                scratch_shapes=[pltpu.VMEM((R, 1), jnp.float32)])
            kernel = _gem_kernel_generic_rows_hw(eps, HW, hw_tile)
            sems = ("parallel", "arbitrary")

        out2d = pl.pallas_call(
            kernel,
            out_shape=out_shape,
            grid_spec=grid_spec,
            compiler_params=pltpu.CompilerParams(
                dimension_semantics=sems, vmem_limit_bytes=int(vmem_limit)),
            cost_estimate=cost,
        )(p_arr, x2d)

    return out2d.reshape(B, C, 1, 1)


def gem_ref(x, p, eps=1e-6):
    """Pure-JAX reference matching the PyTorch gem()."""
    xf = x.astype(jnp.float32)
    xc = jnp.maximum(xf, jnp.float32(eps))
    pooled = jnp.mean(xc ** jnp.float32(p), axis=(-2, -1), keepdims=True)
    return pooled ** (1.0 / jnp.float32(p))


if __name__ == "__main__":
    key = jax.random.PRNGKey(0)
    eps = 1e-6
    B, C, H, W = 2, 4, 16, 16
    x = jax.random.uniform(key, (B, C, H, W), dtype=jnp.float32)

    # --- 1) default module config: p = 3 -> VPU-multiply specialization ---
    p = 3.0
    out = gem_pallas(x, p, eps)
    jax.block_until_ready(out)
    ref = gem_ref(x, p, eps).astype(out.dtype)
    assert out.shape == (B, C, 1, 1), out.shape
    assert jnp.allclose(out, ref, atol=1e-5, rtol=1e-4), (
        float(jnp.max(jnp.abs(out - ref))))

    # --- 2) half-integer p -> x^2 * sqrt(x) specialization ---
    p2 = 2.5
    out2 = gem_pallas(x, p2, eps)
    jax.block_until_ready(out2)
    ref2 = gem_ref(x, p2, eps).astype(out2.dtype)
    assert jnp.allclose(out2, ref2, atol=1e-5, rtol=1e-4), (
        float(jnp.max(jnp.abs(out2 - ref2))))

    # --- 3) traced (learnable) p under jit -> generic SMEM-prefetch path ---
    gem_jit = jax.jit(lambda xx, pp: gem_pallas(xx, pp, eps))
    out3 = gem_jit(x, jnp.float32(3.0))
    jax.block_until_ready(out3)
    ref3 = gem_ref(x, 3.0, eps).astype(out3.dtype)
    assert jnp.allclose(out3, ref3, atol=1e-5, rtol=1e-4), (
        float(jnp.max(jnp.abs(out3 - ref3))))

    # --- 4) bf16 storage; bf16 VALU fast path on v6e/v7x, f32 on v5e ---
    xb = x.astype(jnp.bfloat16)
    outb = gem_pallas(xb, p, eps)
    jax.block_until_ready(outb)
    refb = gem_ref(xb, p, eps).astype(jnp.bfloat16)
    assert outb.shape == (B, C, 1, 1), outb.shape
    assert jnp.allclose(outb.astype(jnp.float32), refb.astype(jnp.float32),
                        atol=3e-2, rtol=3e-2)

    # --- 5) forced tiny VMEM budget -> HW-tiled accumulator path + masking ---
    x5 = jax.random.uniform(jax.random.PRNGKey(1), (2, 4, 40, 50),
                            dtype=jnp.float32)
    out5 = gem_pallas(x5, p, eps, vmem_budget_bytes=100_000)
    jax.block_until_ready(out5)
    ref5 = gem_ref(x5, p, eps).astype(out5.dtype)
    assert out5.shape == (2, 4, 1, 1), out5.shape
    assert jnp.allclose(out5, ref5, atol=1e-5, rtol=1e-4), (
        float(jnp.max(jnp.abs(out5 - ref5))))

    print("KERNEL_OK")
</pallas_src>

<mosaic_0001>
module attributes {stable_mosaic.version = 11 : i64} {
  func.func @kernel(%arg0: i32, %arg1: memref<8x256xf32, #tpu.memory_space<vmem>>, %arg2: memref<8x1xf32, #tpu.memory_space<vmem>>) attributes {dimension_semantics = [#tpu.dimension_semantics<parallel>], iteration_bounds = array<i64: 1>, scalar_prefetch = 0 : i64, scratch_operands = 0 : i64, tpu.core_type = #tpu.core_type<tc>, window_params = [{transform_indices = @transform_0, window_bounds = array<i64: 8, 256>}, {transform_indices = @transform_1, window_bounds = array<i64: 8, 1>}]} {
    %c0 = arith.constant 0 : index
    %c0_0 = arith.constant 0 : index
    %0 = vector.load %arg1[%c0, %c0_0] : memref<8x256xf32, #tpu.memory_space<vmem>>, vector<8x256xf32>
    %cst = arith.constant 9.99999997E-7 : f32
    %1 = vector.broadcast %cst : f32 to vector<8x256xf32>
    %2 = arith.maximumf %0, %1 : vector<8x256xf32>
    %3 = arith.mulf %2, %2 : vector<8x256xf32>
    %4 = arith.mulf %2, %3 : vector<8x256xf32>
    %cst_1 = arith.constant dense<0.000000e+00> : vector<8xf32>
    %5 = vector.multi_reduction <add>, %4, %cst_1 [1] : vector<8x256xf32> to vector<8xf32>
    %6 = vector.shape_cast %5 : vector<8xf32> to vector<8x1xf32>
    %cst_2 = arith.constant 3.906250e-03 : f32
    %7 = vector.broadcast %cst_2 : f32 to vector<8x1xf32>
    %8 = arith.mulf %6, %7 : vector<8x1xf32>
    %9 = math.log %8 : vector<8x1xf32>
    %cst_3 = arith.constant 0.333333343 : f32
    %10 = vector.broadcast %cst_3 : f32 to vector<8x1xf32>
    %11 = arith.mulf %10, %9 : vector<8x1xf32>
    %12 = math.exp %11 : vector<8x1xf32>
    %c0_4 = arith.constant 0 : index
    %c0_5 = arith.constant 0 : index
    %13 = vector.load %arg2[%c0_4, %c0_5] : memref<8x1xf32, #tpu.memory_space<vmem>>, vector<8x1xf32>
    tpu.vector_store %arg2[%c0_4, %c0_5], %12 {strides = array<i32>} : memref<8x1xf32, #tpu.memory_space<vmem>>, vector<8x1xf32>,
    return
  }
  func.func @transform_0(%arg0: i32) -> (i32, i32) {
    %c0_i32 = arith.constant 0 : i32
    %c0_i32_0 = arith.constant 0 : i32
    return %arg0, %c0_i32 : i32, i32
  }
  func.func @transform_1(%arg0: i32) -> (i32, i32) {
    %c0_i32 = arith.constant 0 : i32
    %c0_i32_0 = arith.constant 0 : i32
    return %arg0, %c0_i32 : i32, i32
  }
}

</mosaic_0001>

<bundles_post_ra>
// kernel: tpu_custom_call.1
= control target key start
LH: loop header
LB: loop body
LE: loop exit
PB: predicated region body
PF: predicated region fallthrough
CT: control target
= control target key end

     0   :  { %6 = vsyncpa [#allocation3], 0  ;;  %s71_s6 = smov [#allocation2]   ;;  %s88_s0 = inlined_call_operand.hbm [shape: f32[8,256], index: 0, kind: input, shape index: {}]   ;;  %s89_s1 = inlined_call_operand.vmem [shape: f32[8,1], index: 1, kind: output, shape index: {}]  }
   0x1   :  { %s13_s7 = sshll.u32 %s71_s6, 4  ;;  %s14_s7 = int_to_ptr.vmem [resolvable:$true] %s13_s7 }
   0x2   :  { %s57_s8 = scalar_lea.vmem %s14_s7, 256  ;;  %p62_p1 = scmp.lt.s32.totalorder %s14_s7, %s14_s7 }
   0x3   :  { %p58_p0 = scmp.ne.s32.totalorder %s14_s7, %s57_s8  ;;  %p63_p2 = scmp.lt.s32.totalorder %s57_s8, %s57_s8 }
   0x5   :  { %p64_p3 = por %p63_p2, %p62_p1 }
   0x7   :  { %p65_p4 = pnand %p64_p3, %p58_p0 }
   0x9   :  { %68 = shalt.err (!%p65_p4)
}
   0xa   :  { %16 = dma.hbm_to_vmem [thread:$0]  %s88_s0, 256, %s14_s7, [#allocation3]  }
   0xb   :  { %69 = dma.done.wait [#allocation3], 256  }
   0xc   :  { %70 = vsyncadd [#allocation3], 4294967040  ;;  %v20_v0 = vld [vmem:[#allocation2] sm:$0xff]  ;;  %v21_v1 = vld [vmem:[#allocation2 + $0x8] sm:$0xff]  ;;  %vm37_vm0 = vcmask 7168  }
   0xd   :  { %v22_v2 = vmax.f32 %v20_v0, 1e-06  ;;  %v23_v3 = vmax.f32 %v21_v1, 1e-06 }
   0xf   :  { %v24_v4 = vmul.f32 %v22_v2, %v22_v2  ;;  %v25_v5 = vmul.f32 %v23_v3, %v23_v3 }
  0x11   :  { %v26_v6 = vmul.f32 %v24_v4, %v22_v2  ;;  %v27_v7 = vmul.f32 %v25_v5, %v23_v3 }
  0x13   :  { %v28_v8 = vadd.f32 %v27_v7, %v26_v6 }
  0x15   :  { %29 = vadd.xlane.f32.xlu0 %v28_v8 }
  0x9e   :  { %v30_v9 = vpop.xlane.xlu0 %29 }
  0x9f   :  { %v31_v10 = vmul.f32 0.00390625, %v30_v9 }
  0xa1   :  { %45 = vlog2.f32 %v31_v10 }
  0xae   :  { %v46_v11 = vpop.eup %45 }
  0xaf   :  { %v33_v12 = vmul.f32 0.6931472, %v46_v11 }
  0xb1   :  { %v34_v13 = vmul.f32 0.33333334, %v33_v12 }
  0xb3   :  { %v35_v14 = vmul.f32 1.442695, %v34_v13 }
  0xb5   :  { %47 = vpow2.f32 %v35_v14 }
  0xc2   :  { %v48_v15 = vpop.eup %47 }
  0xc3   :  { %38 = vst.msk [vmem:[%s89_s1] sm:$0xff] %vm37_vm0, %v48_v15 }
  0xc4   :  { %43 = vsyncpa [#allocation3], 1 }

</bundles_post_ra>
